<compile_context>
chip_gen: v7x
topology: tpu7x:2x2x1
jax: 0.10.0
libtpu: 0.0.40
codegen_flags: <defaults>
</compile_context>

<pallas_src>
import functools

import jax
import jax.numpy as jnp
from jax import lax
from jax.experimental import pallas as pl
from jax.experimental.pallas import tpu as pltpu

KSIZE = 4            # Conv3d kernel size
EPS = 1e-5           # InstanceNorm3d default eps
NEG_SLOPE = 0.2      # LeakyReLU slope
VMEM_LIMIT_BYTES = 48 * 1024 * 1024   # fits v7x (64 MiB phys) and v5e/v6e


def _round_up(x, m):
    return (x + m - 1) // m * m


def _stats_kernel(y_ref, mean_ref, rstd_ref, sum_ref, sq_ref, *, true_p):
    """Pass 1: per-(sample, channel) sum / sum-of-squares over the P axis.

    y_ref:    (1, Cout, TP) f32 lane-dense conv-output tile
    mean_ref: (1, Cout, 1)  f32
    rstd_ref: (1, Cout, 1)  f32
    sum_ref/sq_ref: (Cout, 1) f32 VMEM accumulators (persist across t)
    """
    t = pl.program_id(1)

    @pl.when(t == 0)
    def _init():
        sum_ref[...] = jnp.zeros_like(sum_ref)
        sq_ref[...] = jnp.zeros_like(sq_ref)

    y = y_ref[0]                                          # (Cout, TP)
    sum_ref[...] += jnp.sum(y, axis=1, keepdims=True)     # pad lanes are zero
    sq_ref[...] += jnp.sum(y * y, axis=1, keepdims=True)

    @pl.when(t == pl.num_programs(1) - 1)
    def _finalize():
        inv_p = 1.0 / true_p                              # divide by TRUE P
        mean = sum_ref[...] * inv_p
        var = jnp.maximum(sq_ref[...] * inv_p - mean * mean, 0.0)
        mean_ref[0] = mean
        rstd_ref[0] = lax.rsqrt(var + EPS)


def _norm_lrelu_kernel(y_ref, mean_ref, rstd_ref, o_ref):
    """Pass 2: (y - mean) * rstd -> LeakyReLU(0.2) -> (Dropout = identity)."""
    y = y_ref[0]                                          # (Cout, TP)
    yn = (y - mean_ref[0]) * rstd_ref[0]                  # lane broadcast
    o_ref[0] = jnp.where(yn >= 0, yn, NEG_SLOPE * yn).astype(o_ref.dtype)


@functools.partial(jax.jit, static_argnames=("tile_p",))
def residual_block_forward(x, weight, *, tile_p=2048):
    """x: (N, Cin, D, H, W); weight: (Cout, Cin, 4, 4, 4) -> (N, Cout, D, H, W)."""
    n, cin, d, h, w = x.shape
    cout = weight.shape[0]

    # Conv3d(k=4, s=1, p=1, bias=False).  Delegated to XLA's conv emitter
    # (review option (b)) — avoids the 64x im2col HBM blow-up while keeping the
    # MXU fed; the fused norm/activation below is the Pallas hot path.
    y = lax.conv_general_dilated(
        x, weight, window_strides=(1, 1, 1), padding=[(1, 1)] * 3,
        dimension_numbers=("NCDHW", "OIDHW", "NCDHW"))
    do, ho, wo = d - 1, h - 1, w - 1
    p_true = do * ho * wo

    # Lane-dense layout: (N, Cout, P) with P in the lane axis, padded to a
    # multiple of 128 (and of the tile) so every load/store is unmasked.
    y = y.reshape(n, cout, p_true).astype(jnp.float32)
    tp = min(_round_up(p_true, 128), _round_up(tile_p, 128))
    p_pad = _round_up(p_true, tp)
    if p_pad != p_true:
        y = jnp.pad(y, ((0, 0), (0, 0), (0, p_pad - p_true)))
    num_t = p_pad // tp

    # Pass 1: InstanceNorm statistics (scratch accumulation across P tiles).
    mean, rstd = pl.pallas_call(
        functools.partial(_stats_kernel, true_p=float(p_true)),
        out_shape=(jax.ShapeDtypeStruct((n, cout, 1), jnp.float32),
                   jax.ShapeDtypeStruct((n, cout, 1), jnp.float32)),
        grid_spec=pltpu.PrefetchScalarGridSpec(
            num_scalar_prefetch=0,
            grid=(n, num_t),
            in_specs=[pl.BlockSpec((1, cout, tp), lambda b, t: (b, 0, t))],
            out_specs=(pl.BlockSpec((1, cout, 1), lambda b, t: (b, 0, 0)),
                       pl.BlockSpec((1, cout, 1), lambda b, t: (b, 0, 0))),
            scratch_shapes=[pltpu.VMEM((cout, 1), jnp.float32),
                            pltpu.VMEM((cout, 1), jnp.float32)]),
        compiler_params=pltpu.CompilerParams(
            dimension_semantics=("parallel", "arbitrary"),
            vmem_limit_bytes=VMEM_LIMIT_BYTES),
    )(y)

    # Pass 2: normalize + LeakyReLU (+ eval-mode Dropout), lane-dense stores.
    # (pipeline_mode=pl.Buffered(3) on the y spec is a further tuning knob if
    #  the streaming DMA is still exposed.)
    out = pl.pallas_call(
        _norm_lrelu_kernel,
        out_shape=jax.ShapeDtypeStruct((n, cout, p_pad), jnp.float32),
        grid_spec=pltpu.PrefetchScalarGridSpec(
            num_scalar_prefetch=0,
            grid=(n, num_t),
            in_specs=[pl.BlockSpec((1, cout, tp), lambda b, t: (b, 0, t)),
                      pl.BlockSpec((1, cout, 1), lambda b, t: (b, 0, 0)),
                      pl.BlockSpec((1, cout, 1), lambda b, t: (b, 0, 0))],
            out_specs=pl.BlockSpec((1, cout, tp), lambda b, t: (b, 0, t))),
        compiler_params=pltpu.CompilerParams(
            dimension_semantics=("parallel", "parallel"),
            vmem_limit_bytes=VMEM_LIMIT_BYTES),
    )(y, mean, rstd)

    # TODO(synk): nn.Dropout is stochastic in train mode; forward here uses
    # eval-mode semantics (identity).
    out = out[:, :, :p_true].reshape(n, cout, do, ho, wo)
    # F.pad(x, (1,0,1,0,1,0)): left-pad W, H, D by 1 each.
    out = jnp.pad(out, ((0, 0), (0, 0), (1, 0), (1, 0), (1, 0)))
    return out.astype(x.dtype)


def _reference_forward(x, weight):
    """Pure-JAX reference for correctness check."""
    y = lax.conv_general_dilated(
        x, weight, window_strides=(1, 1, 1), padding=[(1, 1)] * 3,
        dimension_numbers=("NCDHW", "OIDHW", "NCDHW"))
    mean = jnp.mean(y, axis=(2, 3, 4), keepdims=True)
    var = jnp.mean((y - mean) ** 2, axis=(2, 3, 4), keepdims=True)
    y = (y - mean) * lax.rsqrt(var + EPS)
    y = jnp.where(y >= 0, y, NEG_SLOPE * y)
    return jnp.pad(y, ((0, 0), (0, 0), (1, 0), (1, 0), (1, 0)))


if __name__ == "__main__":
    # Small shapes consistent with the module: NCDHW input.
    N, CIN, COUT = 2, 4, 8
    D = H = W = 8
    key = jax.random.PRNGKey(0)
    kx, kw = jax.random.split(key)

    x = jax.random.normal(kx, (N, CIN, D, H, W), dtype=jnp.float32)

    # Deterministic kaiming_uniform_ (a=0, fan_in, leaky_relu gain=sqrt(2)).
    fan_in = CIN * KSIZE ** 3
    bound = (6.0 / fan_in) ** 0.5
    weight = jax.random.uniform(
        kw, (COUT, CIN, KSIZE, KSIZE, KSIZE),
        minval=-bound, maxval=bound, dtype=jnp.float32)

    # tile_p=128 forces a multi-tile P sweep (P=343 -> 3 tiles of 128) so the
    # scratch-accumulated InstanceNorm path is actually exercised.
    out = residual_block_forward(x, weight, tile_p=128)
    out = jax.block_until_ready(out)

    ref = _reference_forward(x, weight)
    assert out.shape == (N, COUT, D, H, W), out.shape
    assert jnp.allclose(out, ref, atol=1e-4, rtol=1e-4), "mismatch vs reference"

    print("KERNEL_OK")
</pallas_src>

<mosaic_0001>
module attributes {stable_mosaic.version = 11 : i64} {
  func.func @_stats_kernel(%arg0: i32, %arg1: i32, %arg2: memref<1x8x128xf32, #tpu.memory_space<vmem>>, %arg3: memref<1x8x1xf32, #tpu.memory_space<vmem>>, %arg4: memref<1x8x1xf32, #tpu.memory_space<vmem>>, %arg5: memref<8x1xf32, #tpu.memory_space<vmem>>, %arg6: memref<8x1xf32, #tpu.memory_space<vmem>>) attributes {dimension_semantics = [#tpu.dimension_semantics<parallel>, #tpu.dimension_semantics<arbitrary>], iteration_bounds = array<i64: 2, 3>, scalar_prefetch = 0 : i64, scratch_operands = 2 : i64, tpu.core_type = #tpu.core_type<tc>, window_params = [{transform_indices = @transform_0, window_bounds = array<i64: 1, 8, 128>}, {transform_indices = @transform_1, window_bounds = array<i64: 1, 8, 1>}, {transform_indices = @transform_2, window_bounds = array<i64: 1, 8, 1>}]} {
    %c0_i32 = arith.constant 0 : i32
    %0 = arith.cmpi eq, %arg1, %c0_i32 : i32
    %1 = arith.extui %0 : i1 to i32
    %c0_i32_0 = arith.constant 0 : i32
    %2 = arith.cmpi ne, %1, %c0_i32_0 : i32
    scf.if %2 {
      %cst_13 = arith.constant 0.000000e+00 : f32
      %19 = vector.broadcast %cst_13 : f32 to vector<8x1xf32>
      %c0_14 = arith.constant 0 : index
      %c0_15 = arith.constant 0 : index
      %20 = vector.load %arg5[%c0_14, %c0_15] : memref<8x1xf32, #tpu.memory_space<vmem>>, vector<8x1xf32>
      tpu.vector_store %arg5[%c0_14, %c0_15], %19 {strides = array<i32>} : memref<8x1xf32, #tpu.memory_space<vmem>>, vector<8x1xf32>,
      %cst_16 = arith.constant 0.000000e+00 : f32
      %21 = vector.broadcast %cst_16 : f32 to vector<8x1xf32>
      %c0_17 = arith.constant 0 : index
      %c0_18 = arith.constant 0 : index
      %22 = vector.load %arg6[%c0_17, %c0_18] : memref<8x1xf32, #tpu.memory_space<vmem>>, vector<8x1xf32>
      tpu.vector_store %arg6[%c0_17, %c0_18], %21 {strides = array<i32>} : memref<8x1xf32, #tpu.memory_space<vmem>>, vector<8x1xf32>,
    } else {
    }
    %c0 = arith.constant 0 : index
    %c0_1 = arith.constant 0 : index
    %c0_2 = arith.constant 0 : index
    %3 = vector.load %arg2[%c0, %c0_1, %c0_2] : memref<1x8x128xf32, #tpu.memory_space<vmem>>, vector<1x8x128xf32>
    %4 = vector.shape_cast %3 : vector<1x8x128xf32> to vector<8x128xf32>
    %c0_3 = arith.constant 0 : index
    %c0_4 = arith.constant 0 : index
    %5 = vector.load %arg5[%c0_3, %c0_4] : memref<8x1xf32, #tpu.memory_space<vmem>>, vector<8x1xf32>
    %cst = arith.constant dense<0.000000e+00> : vector<8xf32>
    %6 = vector.multi_reduction <add>, %4, %cst [1] : vector<8x128xf32> to vector<8xf32>
    %7 = vector.shape_cast %6 : vector<8xf32> to vector<8x1xf32>
    %8 = arith.addf %5, %7 : vector<8x1xf32>
    %c0_5 = arith.constant 0 : index
    %c0_6 = arith.constant 0 : index
    %9 = vector.load %arg5[%c0_5, %c0_6] : memref<8x1xf32, #tpu.memory_space<vmem>>, vector<8x1xf32>
    tpu.vector_store %arg5[%c0_5, %c0_6], %8 {strides = array<i32>} : memref<8x1xf32, #tpu.memory_space<vmem>>, vector<8x1xf32>,
    %c0_7 = arith.constant 0 : index
    %c0_8 = arith.constant 0 : index
    %10 = vector.load %arg6[%c0_7, %c0_8] : memref<8x1xf32, #tpu.memory_space<vmem>>, vector<8x1xf32>
    %11 = arith.mulf %4, %4 : vector<8x128xf32>
    %cst_9 = arith.constant dense<0.000000e+00> : vector<8xf32>
    %12 = vector.multi_reduction <add>, %11, %cst_9 [1] : vector<8x128xf32> to vector<8xf32>
    %13 = vector.shape_cast %12 : vector<8xf32> to vector<8x1xf32>
    %14 = arith.addf %10, %13 : vector<8x1xf32>
    %c0_10 = arith.constant 0 : index
    %c0_11 = arith.constant 0 : index
    %15 = vector.load %arg6[%c0_10, %c0_11] : memref<8x1xf32, #tpu.memory_space<vmem>>, vector<8x1xf32>
    tpu.vector_store %arg6[%c0_10, %c0_11], %14 {strides = array<i32>} : memref<8x1xf32, #tpu.memory_space<vmem>>, vector<8x1xf32>,
    %c2_i32 = arith.constant 2 : i32
    %16 = arith.cmpi eq, %arg1, %c2_i32 : i32
    %17 = arith.extui %16 : i1 to i32
    %c0_i32_12 = arith.constant 0 : i32
    %18 = arith.cmpi ne, %17, %c0_i32_12 : i32
    scf.if %18 {
      %c0_13 = arith.constant 0 : index
      %c0_14 = arith.constant 0 : index
      %19 = vector.load %arg5[%c0_13, %c0_14] : memref<8x1xf32, #tpu.memory_space<vmem>>, vector<8x1xf32>
      %cst_15 = arith.constant 0.002915452 : f32
      %20 = vector.broadcast %cst_15 : f32 to vector<8x1xf32>
      %21 = arith.mulf %19, %20 : vector<8x1xf32>
      %c0_16 = arith.constant 0 : index
      %c0_17 = arith.constant 0 : index
      %22 = vector.load %arg6[%c0_16, %c0_17] : memref<8x1xf32, #tpu.memory_space<vmem>>, vector<8x1xf32>
      %cst_18 = arith.constant 0.002915452 : f32
      %23 = vector.broadcast %cst_18 : f32 to vector<8x1xf32>
      %24 = arith.mulf %22, %23 : vector<8x1xf32>
      %25 = arith.mulf %21, %21 : vector<8x1xf32>
      %26 = arith.subf %24, %25 : vector<8x1xf32>
      %cst_19 = arith.constant 0.000000e+00 : f32
      %27 = vector.broadcast %cst_19 : f32 to vector<8x1xf32>
      %28 = arith.maximumf %26, %27 : vector<8x1xf32>
      %c0_20 = arith.constant 0 : index
      %c0_21 = arith.constant 0 : index
      %c0_22 = arith.constant 0 : index
      %29 = vector.load %arg3[%c0_20, %c0_21, %c0_22] : memref<1x8x1xf32, #tpu.memory_space<vmem>>, vector<1x8x1xf32>
      %30 = vector.shape_cast %29 : vector<1x8x1xf32> to vector<8x1xf32>
      %31 = vector.shape_cast %21 : vector<8x1xf32> to vector<1x8x1xf32>
      tpu.vector_store %arg3[%c0_20, %c0_21, %c0_22], %31 {strides = array<i32>} : memref<1x8x1xf32, #tpu.memory_space<vmem>>, vector<1x8x1xf32>,
      %cst_23 = arith.constant 9.99999974E-6 : f32
      %32 = vector.broadcast %cst_23 : f32 to vector<8x1xf32>
      %33 = arith.addf %28, %32 : vector<8x1xf32>
      %34 = math.rsqrt %33 : vector<8x1xf32>
      %c0_24 = arith.constant 0 : index
      %c0_25 = arith.constant 0 : index
      %c0_26 = arith.constant 0 : index
      %35 = vector.load %arg4[%c0_24, %c0_25, %c0_26] : memref<1x8x1xf32, #tpu.memory_space<vmem>>, vector<1x8x1xf32>
      %36 = vector.shape_cast %35 : vector<1x8x1xf32> to vector<8x1xf32>
      %37 = vector.shape_cast %34 : vector<8x1xf32> to vector<1x8x1xf32>
      tpu.vector_store %arg4[%c0_24, %c0_25, %c0_26], %37 {strides = array<i32>} : memref<1x8x1xf32, #tpu.memory_space<vmem>>, vector<1x8x1xf32>,
    } else {
    }
    return
  }
  func.func @transform_0(%arg0: i32, %arg1: i32) -> (i32, i32, i32) {
    %c0_i32 = arith.constant 0 : i32
    %c0_i32_0 = arith.constant 0 : i32
    return %arg0, %c0_i32, %arg1 : i32, i32, i32
  }
  func.func @transform_1(%arg0: i32, %arg1: i32) -> (i32, i32, i32) {
    %c0_i32 = arith.constant 0 : i32
    %c0_i32_0 = arith.constant 0 : i32
    %c0_i32_1 = arith.constant 0 : i32
    return %arg0, %c0_i32, %c0_i32_0 : i32, i32, i32
  }
  func.func @transform_2(%arg0: i32, %arg1: i32) -> (i32, i32, i32) {
    %c0_i32 = arith.constant 0 : i32
    %c0_i32_0 = arith.constant 0 : i32
    %c0_i32_1 = arith.constant 0 : i32
    return %arg0, %c0_i32, %c0_i32_0 : i32, i32, i32
  }
}

module attributes {stable_mosaic.version = 11 : i64} {
  func.func @_norm_lrelu_kernel(%arg0: i32, %arg1: i32, %arg2: memref<1x8x128xf32, #tpu.memory_space<vmem>>, %arg3: memref<1x8x1xf32, #tpu.memory_space<vmem>>, %arg4: memref<1x8x1xf32, #tpu.memory_space<vmem>>, %arg5: memref<1x8x128xf32, #tpu.memory_space<vmem>>) attributes {dimension_semantics = [#tpu.dimension_semantics<parallel>, #tpu.dimension_semantics<parallel>], iteration_bounds = array<i64: 2, 3>, scalar_prefetch = 0 : i64, scratch_operands = 0 : i64, tpu.core_type = #tpu.core_type<tc>, window_params = [{transform_indices = @transform_0, window_bounds = array<i64: 1, 8, 128>}, {transform_indices = @transform_1, window_bounds = array<i64: 1, 8, 1>}, {transform_indices = @transform_2, window_bounds = array<i64: 1, 8, 1>}, {transform_indices = @transform_3, window_bounds = array<i64: 1, 8, 128>}]} {
    %c0 = arith.constant 0 : index
    %c0_0 = arith.constant 0 : index
    %c0_1 = arith.constant 0 : index
    %0 = vector.load %arg2[%c0, %c0_0, %c0_1] : memref<1x8x128xf32, #tpu.memory_space<vmem>>, vector<1x8x128xf32>
    %1 = vector.shape_cast %0 : vector<1x8x128xf32> to vector<8x128xf32>
    %c0_2 = arith.constant 0 : index
    %c0_3 = arith.constant 0 : index
    %c0_4 = arith.constant 0 : index
    %2 = vector.load %arg3[%c0_2, %c0_3, %c0_4] : memref<1x8x1xf32, #tpu.memory_space<vmem>>, vector<1x8x1xf32>
    %3 = vector.shape_cast %2 : vector<1x8x1xf32> to vector<8x1xf32>
    %4 = vector.broadcast %3 : vector<8x1xf32> to vector<8x128xf32>
    %5 = arith.subf %1, %4 : vector<8x128xf32>
    %c0_5 = arith.constant 0 : index
    %c0_6 = arith.constant 0 : index
    %c0_7 = arith.constant 0 : index
    %6 = vector.load %arg4[%c0_5, %c0_6, %c0_7] : memref<1x8x1xf32, #tpu.memory_space<vmem>>, vector<1x8x1xf32>
    %7 = vector.shape_cast %6 : vector<1x8x1xf32> to vector<8x1xf32>
    %8 = vector.broadcast %7 : vector<8x1xf32> to vector<8x128xf32>
    %9 = arith.mulf %5, %8 : vector<8x128xf32>
    %cst = arith.constant 0.000000e+00 : f32
    %10 = vector.broadcast %cst : f32 to vector<8x128xf32>
    %11 = arith.cmpf oge, %9, %10 : vector<8x128xf32>
    %cst_8 = arith.constant 2.000000e-01 : f32
    %12 = vector.broadcast %cst_8 : f32 to vector<8x128xf32>
    %13 = arith.mulf %12, %9 : vector<8x128xf32>
    %14 = arith.select %11, %9, %13 : vector<8x128xi1>, vector<8x128xf32>
    %c0_9 = arith.constant 0 : index
    %c0_10 = arith.constant 0 : index
    %c0_11 = arith.constant 0 : index
    %15 = vector.load %arg5[%c0_9, %c0_10, %c0_11] : memref<1x8x128xf32, #tpu.memory_space<vmem>>, vector<1x8x128xf32>
    %16 = vector.shape_cast %15 : vector<1x8x128xf32> to vector<8x128xf32>
    %17 = vector.shape_cast %14 : vector<8x128xf32> to vector<1x8x128xf32>
    tpu.vector_store %arg5[%c0_9, %c0_10, %c0_11], %17 {strides = array<i32>} : memref<1x8x128xf32, #tpu.memory_space<vmem>>, vector<1x8x128xf32>,
    return
  }
  func.func @transform_0(%arg0: i32, %arg1: i32) -> (i32, i32, i32) {
    %c0_i32 = arith.constant 0 : i32
    %c0_i32_0 = arith.constant 0 : i32
    return %arg0, %c0_i32, %arg1 : i32, i32, i32
  }
  func.func @transform_1(%arg0: i32, %arg1: i32) -> (i32, i32, i32) {
    %c0_i32 = arith.constant 0 : i32
    %c0_i32_0 = arith.constant 0 : i32
    %c0_i32_1 = arith.constant 0 : i32
    return %arg0, %c0_i32, %c0_i32_0 : i32, i32, i32
  }
  func.func @transform_2(%arg0: i32, %arg1: i32) -> (i32, i32, i32) {
    %c0_i32 = arith.constant 0 : i32
    %c0_i32_0 = arith.constant 0 : i32
    %c0_i32_1 = arith.constant 0 : i32
    return %arg0, %c0_i32, %c0_i32_0 : i32, i32, i32
  }
  func.func @transform_3(%arg0: i32, %arg1: i32) -> (i32, i32, i32) {
    %c0_i32 = arith.constant 0 : i32
    %c0_i32_0 = arith.constant 0 : i32
    return %arg0, %c0_i32, %arg1 : i32, i32, i32
  }
}

</mosaic_0001>

<bundles_post_ra>
// kernel: residual_block_forward.2
= control target key start
LH: loop header
LB: loop body
LE: loop exit
PB: predicated region body
PF: predicated region fallthrough
CT: control target
= control target key end

     0   :  { %s424_s9 = smov 0   ;;  %s426_s10 = smov 0   ;;  %s494_s0 = inlined_call_operand.vmem [shape: f32[2,8,384], index: 0, kind: input, shape index: {}]   ;;  %s495_s1 = inlined_call_operand.vmem [shape: f32[2,8,1], index: 1, kind: output, shape index: {0}]   ;;  %s496_s2 = inlined_call_operand.vmem [shape: f32[2,8,1], index: 2, kind: output, shape index: {1}]  }
   0x1   :  { %s428_s11 = smov 0   ;;  %s430_s12 = smov 0  }
   0x2   :  { %s432_s13 = smov 0  }
   0x3 LB: > { %s22_s14 = sadd.s32 1, %s398_s11  ;;  %s25_s15 = sadd.s32 1, %s402_s12  ;;  %s406_s13 = sphi %s432_s13, %s13_s13   ;;  %s402_s12 = sphi %s430_s12, %s500_s12   ;;  %s398_s11 = sphi %s428_s11, %s499_s11   ;;  %s394_s10 = sphi %s426_s10, %s498_s10   ;;  %s390_s9 = sphi %s424_s9, %s497_s9  }
   0x4   : > { %p23_p0 = scmp.ge.s32.totalorder %s22_s14, 3  ;;  %p316_p1 = scmp.ge.s32.totalorder %s406_s13, 1 }
   0x5   : > { %p132_p2 = scmp.lt.s32.totalorder %s406_s13, 7 }
   0x6   : > { %s502_s14 = smov (%p23_p0, %s22_s14), 0  ;;  %s504_s15 = smov (!%p23_p0, %s25_s15), %s402_s12 }
   0x7   : > { %p133_p3 = pnand %p316_p1, %p132_p2  ;;  %p27_p4 = scmp.ge.s32.totalorder %s504_s15, 2 }
   0x8   : > { %p160_p5 = scmp.lt.s32.totalorder (!%p133_p3), %s394_s10, 1  ;;  %p162_p6 = scmp.lt.s32.totalorder (!%p133_p3), %s390_s9, 2 }
   0x9   : > { %s506_s15 = smov (%p27_p4, %s504_s15), 0  ;;  %136 = sbr.rel (%p133_p3) target bundleno = 200 (0xc8), region = 24 }
   0xa   : > { %p320_p7 = scmp.ne.s32.totalorder (!%p133_p3), %s390_s9, 0 }
  0x10   : > { %s508_s10 = smov (!%p160_p5, %s394_s10), 1  ;;  %179 = sbr.rel (%p320_p7) target bundleno = 23 (0x17), region = 28 }
  0x11   : > { %s163_s16 = scalar_select %p162_p6, %s390_s9, 2 }
  0x12   : > { %s324_s17 = smul.u32 3, %s508_s10  ;;  %s318_s18 = sshll.u32 %s508_s10, 3  ;;  %vm180_vm0 = vcmask (!%p320_p7), 7168   ;;  %v408_v0 = vmov (!%p320_p7), 0.0  }
  0x13   : > { %s461_s21 = scalar_lea.vmem %s495_s1, %s318_s18  ;;  %s466_s24 = scalar_lea.vmem %s496_s2, %s318_s18  ;;  %181 = vst.msk [vmem:[#allocation2] sm:$0xff] (!%p320_p7), %vm180_vm0, %v408_v0  ;;  %182 = vst.msk [vmem:[#allocation3] sm:$0xff] (!%p320_p7), %vm180_vm0, %v408_v0 }
  0x14   : > { %s165_s25 = sadd.s32 %s324_s17, %s163_s16 }
  0x15   : > { %s317_s26 = sshll.u32 %s165_s25, 3 }
  0x16   : > { %s167_s29 = scalar_lea.vmem %s494_s0, %s317_s26 }
  0x17 PF: > { %v183_v1 = vld [vmem:[%s167_s29] sm:$0xff]  ;;  %vm188_vm1 = vcmask 7168   ;;  %p321_p8 = scmp.ne.s32.totalorder %s390_s9, 2 }
  0x18   : > { %185 = vadd.xlane.f32.xlu0 %v183_v1  ;;  %v191_v2 = vmul.f32 %v183_v1, %v183_v1 }
  0x1a   : > { %v184_v3 = vld [vmem:[#allocation2] sm:$0xff]  ;;  %v190_v6 = vld [vmem:[#allocation3] sm:$0xff] }
  0x1c   : > { %192 = vadd.xlane.f32.xlu0 %v191_v2 }
  0xa5   : > { %v186_v4 = vpop.xlane.xlu0 %185 }
  0xa6   : > { %v187_v5 = vadd.f32 %v186_v4, %v184_v3  ;;  %199 = sbr.rel (%p321_p8) target bundleno = 200 (0xc8), region = 32 }
  0xa8   : > { %189 = vst.msk [vmem:[#allocation2] sm:$0xff] %vm188_vm1, %v187_v5 }
  0xa9   : > { %v193_v7 = vpop.xlane.xlu0 %192 }
  0xaa   : > { %v194_v8 = vadd.f32 %v193_v7, %v190_v6 }
  0xac   : > { %195 = vst.msk [vmem:[#allocation3] sm:$0xff] %vm188_vm1, %v194_v8 }
  0xaf   : > { %v200_v9 = vld [vmem:[#allocation2] sm:$0xff] }
  0xb0   : > { %v201_v11 = vmul.f32 0.002915452, %v200_v9 }
  0xb2   : > { %v204_v13 = vmul.f32 %v201_v11, %v201_v11  ;;  %207 = vst.msk [vmem:[%s461_s21] sm:$0xff] %vm188_vm1, %v201_v11 }
  0xb3   : > { %v202_v10 = vld [vmem:[#allocation3] sm:$0xff] }
  0xb4   : > { %v203_v12 = vmul.f32 0.002915452, %v202_v10 }
  0xb6   : > { %v205_v14 = vsub.f32 %v203_v12, %v204_v13 }
  0xb8   : > { %v206_v15 = vmax.f32 %v205_v14, 0.0 }
  0xba   : > { %v208_v16 = vadd.f32 1e-05, %v206_v15 }
  0xbc   : > { %366 = vrsqrt.f32 %v208_v16 }
  0xc6   : > { %v367_v17 = vpop.eup %366 }
  0xc7   : > { %210 = vst.msk [vmem:[%s466_s24] sm:$0xff] %vm188_vm1, %v367_v17 }
  0xc8 PF: > { %s13_s13 = sadd.s32 1, %s406_s13   ;;  %s497_s9 = smov %s398_s11 }
  0xc9   : > { %p10_p9 = scmp.ge.s32.totalorder %s13_s13, 8   ;;  %s498_s10 = smov %s402_s12 }
  0xca   : > { %s499_s11 = smov %s502_s14  ;;  %s500_s12 = smov %s506_s15 }
  0xcb   :  { %12 = sbr.rel (!%p10_p9) target bundleno = 3 (0x3), region = 74 }

// kernel: residual_block_forward.3
= control target key start
LH: loop header
LB: loop body
LE: loop exit
PB: predicated region body
PF: predicated region fallthrough
CT: control target
= control target key end

     0   :  { %s480_s12 = smov 0   ;;  %s482_s13 = smov 0   ;;  %s537_s0 = inlined_call_operand.vmem [shape: f32[2,8,384], index: 0, kind: input, shape index: {}]   ;;  %s538_s1 = inlined_call_operand.vmem [shape: f32[2,8,1], index: 1, kind: input, shape index: {}]   ;;  %s539_s2 = inlined_call_operand.vmem [shape: f32[2,8,1], index: 2, kind: input, shape index: {}]   ;;  %s540_s3 = inlined_call_operand.vmem [shape: f32[2,8,384], index: 3, kind: output, shape index: {}]  }
   0x1   :  { %s484_s14 = smov 0   ;;  %s486_s15 = smov 0  }
   0x2   :  { %s488_s16 = smov 0  }
   0x3 LB: > { %s22_s17 = sadd.s32 1, %s449_s14  ;;  %s25_s18 = sadd.s32 1, %s453_s15  ;;  %s457_s16 = sphi %s488_s16, %s13_s16   ;;  %s453_s15 = sphi %s486_s15, %s544_s15   ;;  %s449_s14 = sphi %s484_s14, %s543_s14   ;;  %s445_s13 = sphi %s482_s13, %s542_s13   ;;  %s441_s12 = sphi %s480_s12, %s541_s12  }
   0x4   : > { %p23_p0 = scmp.ge.s32.totalorder %s22_s17, 3  ;;  %p369_p1 = scmp.ge.s32.totalorder %s457_s16, 1 }
   0x5   : > { %p174_p2 = scmp.lt.s32.totalorder %s457_s16, 7 }
   0x6   : > { %s546_s17 = smov (%p23_p0, %s22_s17), 0  ;;  %s548_s18 = smov (!%p23_p0, %s25_s18), %s453_s15 }
   0x7   : > { %p175_p3 = pnand %p369_p1, %p174_p2  ;;  %p27_p4 = scmp.ge.s32.totalorder %s548_s18, 2 }
   0x8   : > { %p212_p5 = scmp.lt.s32.totalorder (!%p175_p3), %s445_s13, 1  ;;  %v459_v0 = vmov (!%p175_p3), 0   ;;  %p214_p6 = scmp.lt.s32.totalorder (!%p175_p3), %s441_s12, 2 }
   0x9   : > { %s550_s18 = smov (%p27_p4, %s548_s18), 0  ;;  %178 = sbr.rel (%p175_p3) target bundleno = 158 (0x9e), region = 32 }
   0xa   : > { %418 = vset.pattern.permute.xlu0 (!%p175_p3), %v459_v0 }
  0x10   : > { %s552_s13 = smov (!%p212_p5, %s445_s13), 1  ;;  %s554_s12 = smov (!%p214_p6, %s441_s12), 2 }
  0x11   : > { %s371_s19 = sshll.u32 %s552_s13, 3  ;;  %s376_s26 = smul.u32 3, %s552_s13 }
  0x12   : > { %s223_s22 = scalar_lea.vmem %s538_s1, %s371_s19  ;;  %s227_s25 = scalar_lea.vmem %s539_s2, %s371_s19 }
  0x13   : > { %v237_v1 = vld [vmem:[%s223_s22] sm:$0xff]  ;;  %s217_s27 = sadd.s32 %s376_s26, %s554_s12 }
  0x14   : > { %240 = vperm.xlu0 %418, %v237_v1   ;;  %v244_v2 = vld [vmem:[%s227_s25] sm:$0xff]  ;;  %s370_s28 = sshll.u32 %s217_s27, 3 }
  0x15   : > { %s219_s4 = scalar_lea.vmem %s537_s0, %s370_s28  ;;  %s235_s7 = scalar_lea.vmem %s540_s3, %s370_s28 }
  0x16   : > { %v236_v4 = vld [vmem:[%s219_s4] sm:$0xff] }
  0x18   : > { %247 = vperm.xlu0 %418, %v244_v2  }
  0x93   : > { %v241_v3 = vpop.permute.xlu0 %240 }
  0x94   : > { %v243_v5 = vsub.f32 %v236_v4, %v241_v3 }
  0x97   : > { %v248_v6 = vpop.permute.xlu0 %247 }
  0x98   : > { %v250_v7 = vmul.f32 %v248_v6, %v243_v5 }
  0x9a   : > { %vm251_vm0 = vcmp.ge.f32.partialorder %v250_v7, 0.0  ;;  %v252_v8 = vmul.f32 0.2, %v250_v7 }
  0x9c   : > { %v253_v9 = vsel %vm251_vm0, %v250_v7, %v252_v8 }
  0x9d   : > { %254 = vst [vmem:[%s235_s7] sm:$0xff] %v253_v9 }
  0x9e PF: > { %s13_s16 = sadd.s32 1, %s457_s16   ;;  %s541_s12 = smov %s449_s14 }
  0x9f   : > { %p10_p7 = scmp.ge.s32.totalorder %s13_s16, 8   ;;  %s542_s13 = smov %s453_s15 }
  0xa0   : > { %s543_s14 = smov %s546_s17  ;;  %s544_s15 = smov %s550_s18 }
  0xa1   :  { %12 = sbr.rel (!%p10_p7) target bundleno = 3 (0x3), region = 68 }

</bundles_post_ra>
